<compile_context>
chip_gen: v7x
topology: tpu7x:2x2x1
jax: 0.10.0
libtpu: 0.0.40
codegen_flags: <defaults>
</compile_context>

<pallas_src>
import math
from functools import partial

import jax
import jax.numpy as jnp
from jax import lax
from jax.experimental import pallas as pl
from jax.experimental.pallas import tpu as pltpu


def _linear_kernel(x_ref, w_ref, b_ref, o_ref):
    """One (tm, tn) output tile; full K contracted in a single MXU pass.

    x_ref: (tm, Kp)  activation tile (bf16 or f32)
    w_ref: (tn, Kp)  weight tile in PyTorch (out_ch, in_ch) layout
    b_ref: (1, tn)   bias row (f32)
    o_ref: (tm, tn)  output tile
    """
    acc = lax.dot_general(
        x_ref[...], w_ref[...],
        dimension_numbers=(((1,), (1,)), ((), ())),   # contract K with K (W^T)
        preferred_element_type=jnp.float32)
    o_ref[...] = (acc + b_ref[...]).astype(o_ref.dtype)


def _round_up(x, m):
    return (x + m - 1) // m * m


def _pad2d(arr, rows, cols):
    r, c = arr.shape
    return jnp.pad(arr, ((0, rows - r), (0, cols - c)))


@partial(jax.jit, static_argnames=("use_bf16",))
def hgnn_fc_forward(x, weight, bias, *, use_bf16=True):
    """y = x @ weight.T + bias over the last axis of x.

    x:      (..., in_ch)
    weight: (out_ch, in_ch)   -- PyTorch nn.Linear layout (kept as-is)
    bias:   (out_ch,)
    returns (..., out_ch) with x.dtype
    """
    orig_shape = x.shape
    in_ch = orig_shape[-1]
    out_ch, in_ch_w = weight.shape
    assert in_ch == in_ch_w, "weight/in_ch mismatch"

    x2 = x.reshape(-1, in_ch)
    m = x2.shape[0]

    # --- Tile selection -----------------------------------------------------
    # M tile: multiple of 8 sublanes, capped at 256 for big-M pipelining.
    m8 = _round_up(m, 8)
    tm = m8 if m8 <= 256 else 256
    mp = _round_up(m, tm)
    # N tile: lane-dense multiple of 128, capped at 256 (256-aligned for
    # v6e/v7x MXU, multiple of 128 for v5e's 4x128^2 MXU).
    n128 = _round_up(out_ch, 128)
    tn = n128 if n128 <= 256 else 256
    np_ = _round_up(out_ch, tn)
    # K: whole reduction in one lane-aligned block (in_ch is small for this
    # module, so the accumulator / 3rd grid axis would be pure overhead).
    kp = _round_up(in_ch, 128)

    mm_dtype = jnp.bfloat16 if use_bf16 else jnp.float32
    x_p = _pad2d(x2, mp, kp).astype(mm_dtype)
    w_p = _pad2d(weight, np_, kp).astype(mm_dtype)       # no transpose
    b_p = _pad2d(bias.reshape(1, out_ch).astype(jnp.float32), 1, np_)

    grid = (mp // tm, np_ // tn)

    out = pl.pallas_call(
        _linear_kernel,
        out_shape=jax.ShapeDtypeStruct((mp, np_), x.dtype),
        grid_spec=pltpu.PrefetchScalarGridSpec(
            num_scalar_prefetch=0,
            grid=grid,
            in_specs=[
                pl.BlockSpec((tm, kp), lambda i, j: (i, 0)),   # x tile
                pl.BlockSpec((tn, kp), lambda i, j: (j, 0)),   # W tile (row-major)
                pl.BlockSpec((1, tn), lambda i, j: (0, j)),    # bias tile
            ],
            out_specs=pl.BlockSpec((tm, tn), lambda i, j: (i, j)),
        ),
        compiler_params=pltpu.CompilerParams(
            dimension_semantics=("parallel", "parallel"),
        ),
    )(x_p, w_p, b_p)

    y = out[:m, :out_ch]
    return y.reshape(orig_shape[:-1] + (out_ch,))


if __name__ == "__main__":
    # Small shapes consistent with the module: x (batch, seq, in_ch) through a
    # Linear(in_ch, out_ch). Leading dims are flattened inside the wrapper.
    batch, seq = 2, 100
    in_ch, out_ch = 48, 80

    key = jax.random.PRNGKey(0)
    k_x, k_w, k_b = jax.random.split(key, 3)

    x = jax.random.normal(k_x, (batch, seq, in_ch), jnp.float32)
    # nn.Linear default init range ~ U(-1/sqrt(in_ch), 1/sqrt(in_ch)).
    stdv = 1.0 / math.sqrt(in_ch)
    weight = jax.random.uniform(k_w, (out_ch, in_ch), jnp.float32,
                                minval=-stdv, maxval=stdv)
    bias = jax.random.uniform(k_b, (out_ch,), jnp.float32,
                              minval=-stdv, maxval=stdv)

    y = hgnn_fc_forward(x, weight, bias)
    jax.block_until_ready(y)
    assert y.shape == (batch, seq, out_ch)
    assert y.dtype == x.dtype

    # Matched-precision reference (bf16 operands, f32 accumulate) -> tight check.
    xb = x.astype(jnp.bfloat16).astype(jnp.float32)
    wb = weight.T.astype(jnp.bfloat16).astype(jnp.float32)
    ref_bf16 = xb @ wb + bias
    assert jnp.allclose(y, ref_bf16, atol=1e-3, rtol=1e-3)

    # Full-f32 module reference -> semantic fidelity (loose, covers bf16 cast).
    ref_f32 = x @ weight.T + bias
    assert jnp.allclose(y, ref_f32, atol=1e-1, rtol=1e-1)

    print("KERNEL_OK")
</pallas_src>

<mosaic_0001>
module attributes {stable_mosaic.version = 11 : i64} {
  func.func @_linear_kernel(%arg0: i32, %arg1: i32, %arg2: memref<200x128xbf16, #tpu.memory_space<vmem>>, %arg3: memref<128x128xbf16, #tpu.memory_space<vmem>>, %arg4: memref<1x128xf32, #tpu.memory_space<vmem>>, %arg5: memref<200x128xf32, #tpu.memory_space<vmem>>) attributes {dimension_semantics = [#tpu.dimension_semantics<parallel>, #tpu.dimension_semantics<parallel>], iteration_bounds = array<i64: 1, 1>, scalar_prefetch = 0 : i64, scratch_operands = 0 : i64, tpu.core_type = #tpu.core_type<tc>, window_params = [{transform_indices = @transform_0, window_bounds = array<i64: 200, 128>}, {transform_indices = @transform_1, window_bounds = array<i64: 128, 128>}, {transform_indices = @transform_2, window_bounds = array<i64: 1, 128>}, {transform_indices = @transform_3, window_bounds = array<i64: 200, 128>}]} {
    %c0 = arith.constant 0 : index
    %c0_0 = arith.constant 0 : index
    %0 = vector.load %arg2[%c0, %c0_0] : memref<200x128xbf16, #tpu.memory_space<vmem>>, vector<200x128xbf16>
    %c0_1 = arith.constant 0 : index
    %c0_2 = arith.constant 0 : index
    %1 = vector.load %arg3[%c0_1, %c0_2] : memref<128x128xbf16, #tpu.memory_space<vmem>>, vector<128x128xbf16>
    %cst = arith.constant dense<0.000000e+00> : vector<200x128xf32>
    %2 = tpu.matmul %0, %1, %cst {dimension_numbers = #tpu.dot_dimension_numbers<[1], [1], [0], [0], [0, 0, 1, 0], [], []>} : vector<200x128xbf16>, vector<128x128xbf16>, vector<200x128xf32> -> vector<200x128xf32>
    %c0_3 = arith.constant 0 : index
    %c0_4 = arith.constant 0 : index
    %3 = vector.load %arg4[%c0_3, %c0_4] : memref<1x128xf32, #tpu.memory_space<vmem>>, vector<1x128xf32>
    %4 = vector.broadcast %3 : vector<1x128xf32> to vector<200x128xf32>
    %5 = arith.addf %2, %4 : vector<200x128xf32>
    %c0_5 = arith.constant 0 : index
    %c0_6 = arith.constant 0 : index
    %6 = vector.load %arg5[%c0_5, %c0_6] : memref<200x128xf32, #tpu.memory_space<vmem>>, vector<200x128xf32>
    tpu.vector_store %arg5[%c0_5, %c0_6], %5 {strides = array<i32>} : memref<200x128xf32, #tpu.memory_space<vmem>>, vector<200x128xf32>,
    return
  }
  func.func @transform_0(%arg0: i32, %arg1: i32) -> (i32, i32) {
    %c0_i32 = arith.constant 0 : i32
    %c0_i32_0 = arith.constant 0 : i32
    return %arg0, %c0_i32 : i32, i32
  }
  func.func @transform_1(%arg0: i32, %arg1: i32) -> (i32, i32) {
    %c0_i32 = arith.constant 0 : i32
    %c0_i32_0 = arith.constant 0 : i32
    return %arg1, %c0_i32 : i32, i32
  }
  func.func @transform_2(%arg0: i32, %arg1: i32) -> (i32, i32) {
    %c0_i32 = arith.constant 0 : i32
    %c0_i32_0 = arith.constant 0 : i32
    return %c0_i32, %arg1 : i32, i32
  }
  func.func @transform_3(%arg0: i32, %arg1: i32) -> (i32, i32) {
    %c0_i32 = arith.constant 0 : i32
    return %arg0, %arg1 : i32, i32
  }
}

</mosaic_0001>

<bundles_post_ra>
// kernel: hgnn_fc_forward.1
= control target key start
LH: loop header
LB: loop body
LE: loop exit
PB: predicated region body
PF: predicated region fallthrough
CT: control target
= control target key end

     0   :  { %v502_v0 = vmov 0.0   ;;  %vm503_vm0 = vmmov 0   ;;  %s734_s1 = inlined_call_operand.vmem [shape: bf16[128,128], index: 1, kind: input, shape index: {}]   ;;  %s735_s0 = inlined_call_operand.vmem [shape: bf16[200,128], index: 0, kind: input, shape index: {}]   ;;  %s736_s2 = inlined_call_operand.vmem [shape: f32[1,128], index: 2, kind: input, shape index: {}]   ;;  %s737_s3 = inlined_call_operand.vmem [shape: f32[200,128], index: 3, kind: output, shape index: {}]  }
   0x1   :  { %395 = vmatprep.subr.bf16.mxu0 %v502_v0  ;;  %v481_v1 = vld [vmem:[%s734_s1] sm:$0xff]   ;;  %463 = vmatprep.subr.bf16.mxu1 %v502_v0  ;;  %v482_v2 = vld [vmem:[%s734_s1 + $0x8] sm:$0xff]   ;;  %v483_v3 = vld [vmem:[%s734_s1 + $0x10] sm:$0xff]  }
   0x2   :  { %411 = vmatprep.mubr.msk.bf16.mxu0 %vm503_vm0, %v502_v0  ;;  %439 = vmatprep.mubr.msk.bf16.mxu1 %vm503_vm0, %v502_v0  ;;  %v484_v4 = vld [vmem:[%s734_s1 + $0x18] sm:$0xff]   ;;  %v485_v5 = vld [vmem:[%s734_s1 + $0x20] sm:$0xff]   ;;  %v486_v6 = vld [vmem:[%s734_s1 + $0x28] sm:$0xff]  }
   0x3   :  { %396 = vmatpush3.bf16.xpose.msra.mxu0 %v481_v1  ;;  %471 = vmatpush3.bf16.xpose.msra.mxu1 %v481_v1  ;;  %v487_v7 = vld [vmem:[%s734_s1 + $0x30] sm:$0xff]   ;;  %v488_v8 = vld [vmem:[%s734_s1 + $0x38] sm:$0xff]   ;;  %v489_v9 = vld [vmem:[%s735_s0] sm:$0xff]  }
   0x4   :  { %397 = vmatprep.subr.bf16.mxu0 %v502_v0  ;;  %464 = vmatprep.subr.bf16.mxu1 %v502_v0  ;;  %v490_v10 = vld [vmem:[%s735_s0 + $0x38] sm:$0xff]   ;;  %v491_v11 = vld [vmem:[%s735_s0 + $0x8] sm:$0xff]   ;;  %v492_v12 = vld [vmem:[%s735_s0 + $0x40] sm:$0xff]  }
   0x5   :  { %v493_v13 = vld [vmem:[%s735_s0 + $0x10] sm:$0xff]   ;;  %v494_v14 = vld [vmem:[%s735_s0 + $0x48] sm:$0xff]   ;;  %v495_v15 = vld [vmem:[%s735_s0 + $0x18] sm:$0xff]  }
   0x6   :  { %v496_v16 = vld [vmem:[%s735_s0 + $0x50] sm:$0xff]   ;;  %v497_v17 = vld [vmem:[%s735_s0 + $0x20] sm:$0xff]   ;;  %v498_v18 = vld [vmem:[%s735_s0 + $0x58] sm:$0xff]  }
   0x7   :  { %v499_v19 = vld [vmem:[%s735_s0 + $0x28] sm:$0xff]   ;;  %v500_v20 = vld [vmem:[%s735_s0 + $0x60] ss:$0 sps:$4 sm:$0xff]   ;;  %v501_v21 = vld [vmem:[%s735_s0 + $0x30] sm:$0xff]  }
   0x8   :  { %v632_v22 = vld [vmem:[%s736_s2] ss:$0 sm:$0xff] }
   0xb   :  { %398 = vmatpush3.bf16.xpose.msra.mxu0 %v482_v2  ;;  %472 = vmatpush3.bf16.xpose.msra.mxu1 %v482_v2 }
   0xc   :  { %399 = vmatprep.subr.bf16.mxu0 %v502_v0  ;;  %465 = vmatprep.subr.bf16.mxu1 %v502_v0 }
  0x13   :  { %400 = vmatpush3.bf16.xpose.msra.mxu0 %v483_v3  ;;  %473 = vmatpush3.bf16.xpose.msra.mxu1 %v483_v3 }
  0x14   :  { %401 = vmatprep.subr.bf16.mxu0 %v502_v0  ;;  %466 = vmatprep.subr.bf16.mxu1 %v502_v0 }
  0x1b   :  { %402 = vmatpush3.bf16.xpose.msra.mxu0 %v484_v4  ;;  %474 = vmatpush3.bf16.xpose.msra.mxu1 %v484_v4 }
  0x1c   :  { %403 = vmatprep.subr.bf16.mxu0 %v502_v0  ;;  %467 = vmatprep.subr.bf16.mxu1 %v502_v0 }
  0x23   :  { %404 = vmatpush3.bf16.xpose.msra.mxu0 %v485_v5  ;;  %475 = vmatpush3.bf16.xpose.msra.mxu1 %v485_v5 }
  0x24   :  { %405 = vmatprep.subr.bf16.mxu0 %v502_v0  ;;  %468 = vmatprep.subr.bf16.mxu1 %v502_v0 }
  0x2b   :  { %406 = vmatpush3.bf16.xpose.msra.mxu0 %v486_v6  ;;  %476 = vmatpush3.bf16.xpose.msra.mxu1 %v486_v6 }
  0x2c   :  { %407 = vmatprep.subr.bf16.mxu0 %v502_v0  ;;  %469 = vmatprep.subr.bf16.mxu1 %v502_v0 }
  0x33   :  { %408 = vmatpush3.bf16.xpose.msra.mxu0 %v487_v7  ;;  %477 = vmatpush3.bf16.xpose.msra.mxu1 %v487_v7 }
  0x34   :  { %409 = vmatprep.subr.bf16.mxu0 %v502_v0  ;;  %470 = vmatprep.subr.bf16.mxu1 %v502_v0 }
  0x3b   :  { %410 = vmatpush3.bf16.xpose.msra.mxu0 %v488_v8  ;;  %478 = vmatpush3.bf16.xpose.msra.mxu1 %v488_v8 }
  0x42   :  { %412 = vmatmul.mubr.bf16.vlgmr.msra.gmra.mrb[0].mxu0 %v489_v9  ;;  %440 = vmatmul.mubr.bf16.vlgmr.msra.gmra.mrb[0].mxu1 %v490_v10 }
  0x43   :  { %415 = vmatprep.mubr.msk.bf16.mxu0 %vm503_vm0, %v502_v0  ;;  %443 = vmatprep.mubr.msk.bf16.mxu1 %vm503_vm0, %v502_v0 }
  0x4a   :  { %416 = vmatmul.mubr.bf16.gmra.mrb[4].mxu0 %v491_v11  ;;  %444 = vmatmul.mubr.bf16.gmra.mrb[4].mxu1 %v492_v12 }
  0x4b   :  { %419 = vmatprep.mubr.msk.bf16.mxu0 %vm503_vm0, %v502_v0  ;;  %447 = vmatprep.mubr.msk.bf16.mxu1 %vm503_vm0, %v502_v0 }
  0x52   :  { %420 = vmatmul.mubr.bf16.gmra.mrb[8].mxu0 %v493_v13  ;;  %448 = vmatmul.mubr.bf16.gmra.mrb[8].mxu1 %v494_v14 }
  0x53   :  { %423 = vmatprep.mubr.msk.bf16.mxu0 %vm503_vm0, %v502_v0  ;;  %451 = vmatprep.mubr.msk.bf16.mxu1 %vm503_vm0, %v502_v0 }
  0x5a   :  { %424 = vmatmul.mubr.bf16.gmra.mrb[12].mxu0 %v495_v15  ;;  %452 = vmatmul.mubr.bf16.gmra.mrb[12].mxu1 %v496_v16 }
  0x5b   :  { %427 = vmatprep.mubr.msk.bf16.mxu0 %vm503_vm0, %v502_v0  ;;  %455 = vmatprep.mubr.msk.bf16.mxu1 %vm503_vm0, %v502_v0 }
  0x62   :  { %428 = vmatmul.mubr.bf16.gmra.mrb[16].mxu0 %v497_v17  ;;  %456 = vmatmul.mubr.bf16.gmra.mrb[16].mxu1 %v498_v18 }
  0x63   :  { %431 = vmatprep.mubr.msk.bf16.mxu0 %vm503_vm0, %v502_v0  ;;  %459 = vmatprep.mubr.msk.bf16.mxu1 %vm503_vm0, %v502_v0 }
  0x6a   :  { %432 = vmatmul.mubr.bf16.gmra.mrb[20].mxu0 %v499_v19  ;;  %460 = vmatmul.mubr.bf16.gmra.mrb[20].mxu1 %v500_v20 }
  0x6b   :  { %435 = vmatprep.mubr.msk.bf16.mxu0 %vm503_vm0, %v502_v0 }
  0x72   :  { %436 = vmatmul.mubr.bf16.gmra.mrb[24].mxu0 %v501_v21 }
 0x115   :  { %v221_v23 = vpop.f32.mrb[0].mxu0  ;;  %v277_v24 = vpop.f32.mrb[0].mxu1 }
 0x116   :  { %v222_v25 = vadd.f32 %v632_v22, %v221_v23  ;;  %v413_v26 = vpop.f32.mrb[1].mxu0  ;;  %v278_v27 = vadd.f32 %v632_v22, %v277_v24  ;;  %v441_v28 = vpop.f32.mrb[1].mxu1 }
 0x117   :  { %v224_v29 = vpop.f32.mrb[2].mxu0  ;;  %v280_v30 = vpop.f32.mrb[2].mxu1 }
 0x118   :  { %323 = vst [vmem:[%s737_s3] sm:$0xff] %v222_v25  ;;  %v225_v31 = vadd.f32 %v632_v22, %v224_v29  ;;  %v414_v32 = vpop.f32.mrb[3].mxu0  ;;  %337 = vst [vmem:[%s737_s3 + $0x70] sm:$0xff] %v278_v27  ;;  %v281_v33 = vadd.f32 %v632_v22, %v280_v30  ;;  %v442_v34 = vpop.f32.mrb[3].mxu1 }
 0x11a   :  { %324 = vst [vmem:[%s737_s3 + $0x8] sm:$0xff] %v225_v31  ;;  %338 = vst [vmem:[%s737_s3 + $0x78] sm:$0xff] %v281_v33 }
 0x11d   :  { %v229_v35 = vpop.f32.mrb[4].mxu0  ;;  %v285_v36 = vpop.f32.mrb[4].mxu1 }
 0x11e   :  { %v230_v37 = vadd.f32 %v632_v22, %v229_v35  ;;  %v417_v38 = vpop.f32.mrb[5].mxu0  ;;  %v286_v39 = vadd.f32 %v632_v22, %v285_v36  ;;  %v445_v40 = vpop.f32.mrb[5].mxu1 }
 0x11f   :  { %v232_v41 = vpop.f32.mrb[6].mxu0  ;;  %v288_v42 = vpop.f32.mrb[6].mxu1 }
 0x120   :  { %325 = vst [vmem:[%s737_s3 + $0x10] sm:$0xff] %v230_v37  ;;  %v233_v43 = vadd.f32 %v632_v22, %v232_v41  ;;  %v418_v44 = vpop.f32.mrb[7].mxu0  ;;  %339 = vst [vmem:[%s737_s3 + $0x80] sm:$0xff] %v286_v39  ;;  %v289_v45 = vadd.f32 %v632_v22, %v288_v42  ;;  %v446_v46 = vpop.f32.mrb[7].mxu1 }
 0x122   :  { %326 = vst [vmem:[%s737_s3 + $0x18] sm:$0xff] %v233_v43  ;;  %340 = vst [vmem:[%s737_s3 + $0x88] sm:$0xff] %v289_v45 }
 0x125   :  { %v237_v47 = vpop.f32.mrb[8].mxu0  ;;  %v293_v48 = vpop.f32.mrb[8].mxu1 }
 0x126   :  { %v238_v49 = vadd.f32 %v632_v22, %v237_v47  ;;  %v421_v50 = vpop.f32.mrb[9].mxu0  ;;  %v294_v51 = vadd.f32 %v632_v22, %v293_v48  ;;  %v449_v52 = vpop.f32.mrb[9].mxu1 }
 0x127   :  { %v240_v53 = vpop.f32.mrb[10].mxu0  ;;  %v296_v54 = vpop.f32.mrb[10].mxu1 }
 0x128   :  { %327 = vst [vmem:[%s737_s3 + $0x20] sm:$0xff] %v238_v49  ;;  %v241_v55 = vadd.f32 %v632_v22, %v240_v53  ;;  %v422_v56 = vpop.f32.mrb[11].mxu0  ;;  %341 = vst [vmem:[%s737_s3 + $0x90] sm:$0xff] %v294_v51  ;;  %v297_v57 = vadd.f32 %v632_v22, %v296_v54  ;;  %v450_v58 = vpop.f32.mrb[11].mxu1 }
 0x12a   :  { %328 = vst [vmem:[%s737_s3 + $0x28] sm:$0xff] %v241_v55  ;;  %342 = vst [vmem:[%s737_s3 + $0x98] sm:$0xff] %v297_v57 }
 0x12d   :  { %v245_v59 = vpop.f32.mrb[12].mxu0  ;;  %v301_v60 = vpop.f32.mrb[12].mxu1 }
 0x12e   :  { %v246_v61 = vadd.f32 %v632_v22, %v245_v59  ;;  %v425_v62 = vpop.f32.mrb[13].mxu0  ;;  %v302_v63 = vadd.f32 %v632_v22, %v301_v60  ;;  %v453_v0 = vpop.f32.mrb[13].mxu1 }
 0x12f   :  { %v248_v1 = vpop.f32.mrb[14].mxu0  ;;  %v304_v2 = vpop.f32.mrb[14].mxu1 }
 0x130   :  { %329 = vst [vmem:[%s737_s3 + $0x30] sm:$0xff] %v246_v61  ;;  %v249_v3 = vadd.f32 %v632_v22, %v248_v1  ;;  %v426_v4 = vpop.f32.mrb[15].mxu0  ;;  %343 = vst [vmem:[%s737_s3 + $0xa0] sm:$0xff] %v302_v63  ;;  %v305_v5 = vadd.f32 %v632_v22, %v304_v2  ;;  %v454_v6 = vpop.f32.mrb[15].mxu1 }
 0x132   :  { %330 = vst [vmem:[%s737_s3 + $0x38] sm:$0xff] %v249_v3  ;;  %344 = vst [vmem:[%s737_s3 + $0xa8] sm:$0xff] %v305_v5 }
 0x135   :  { %v253_v7 = vpop.f32.mrb[16].mxu0  ;;  %v309_v8 = vpop.f32.mrb[16].mxu1 }
 0x136   :  { %v254_v9 = vadd.f32 %v632_v22, %v253_v7  ;;  %v429_v10 = vpop.f32.mrb[17].mxu0  ;;  %v310_v11 = vadd.f32 %v632_v22, %v309_v8  ;;  %v457_v12 = vpop.f32.mrb[17].mxu1 }
 0x137   :  { %v256_v13 = vpop.f32.mrb[18].mxu0  ;;  %v312_v14 = vpop.f32.mrb[18].mxu1 }
 0x138   :  { %331 = vst [vmem:[%s737_s3 + $0x40] sm:$0xff] %v254_v9  ;;  %v257_v15 = vadd.f32 %v632_v22, %v256_v13  ;;  %v430_v16 = vpop.f32.mrb[19].mxu0  ;;  %345 = vst [vmem:[%s737_s3 + $0xb0] sm:$0xff] %v310_v11  ;;  %v313_v17 = vadd.f32 %v632_v22, %v312_v14  ;;  %v458_v18 = vpop.f32.mrb[19].mxu1 }
 0x13a   :  { %332 = vst [vmem:[%s737_s3 + $0x48] sm:$0xff] %v257_v15  ;;  %346 = vst [vmem:[%s737_s3 + $0xb8] sm:$0xff] %v313_v17 }
 0x13d   :  { %v261_v19 = vpop.f32.mrb[20].mxu0  ;;  %v317_v20 = vpop.f32.mrb[20].mxu1 }
 0x13e   :  { %v262_v21 = vadd.f32 %v632_v22, %v261_v19  ;;  %v433_v23 = vpop.f32.mrb[21].mxu0  ;;  %v318_v24 = vadd.f32 %v632_v22, %v317_v20  ;;  %v461_v25 = vpop.f32.mrb[21].mxu1 }
 0x13f   :  { %v264_v26 = vpop.f32.mrb[22].mxu0  ;;  %v320_v27 = vpop.f32.mrb[22].mxu1 }
 0x140   :  { %333 = vst [vmem:[%s737_s3 + $0x50] sm:$0xff] %v262_v21  ;;  %v265_v28 = vadd.f32 %v632_v22, %v264_v26  ;;  %v434_v29 = vpop.f32.mrb[23].mxu0  ;;  %347 = vst [vmem:[%s737_s3 + $0xc0] sm:$0xff] %v318_v24  ;;  %v462_v30 = vpop.f32.mrb[23].mxu1 }
 0x142   :  { %334 = vst [vmem:[%s737_s3 + $0x58] sm:$0xff] %v265_v28 }
 0x145   :  { %v269_v31 = vpop.f32.mrb[24].mxu0 }
 0x146   :  { %v270_v32 = vadd.f32 %v632_v22, %v269_v31  ;;  %v437_v33 = vpop.f32.mrb[25].mxu0 }
 0x147   :  { %v272_v34 = vpop.f32.mrb[26].mxu0 }
 0x148   :  { %335 = vst [vmem:[%s737_s3 + $0x60] sm:$0xff] %v270_v32  ;;  %v273_v35 = vadd.f32 %v632_v22, %v272_v34  ;;  %v438_v36 = vpop.f32.mrb[27].mxu0 }
 0x14a   :  { %336 = vst [vmem:[%s737_s3 + $0x68] sm:$0xff] %v273_v35 }

</bundles_post_ra>
